<compile_context>
chip_gen: v5e
topology: v5e:2x2
jax: 0.10.0
libtpu: 0.0.40
codegen_flags: <defaults>
</compile_context>

<pallas_src>
import jax
import jax.numpy as jnp
from jax.experimental import pallas as pl
from jax.experimental.pallas import tpu as pltpu

# ----- small, module-consistent shapes -----
B = 2        # batch
S = 8        # sequence length
H = 32       # hidden size
FF = 64      # intermediate (FFN) size
C = 7        # OCEMOTION num labels
VOCAB = 128
NTYPES = 2
LANES = 128  # packed-slab / output lane width

_INV_SQRT_H = 1.0 / (H ** 0.5)


def _layernorm(x, gamma, beta, eps=1e-12):
    mu = jnp.mean(x, axis=-1, keepdims=True)
    var = jnp.mean((x - mu) * (x - mu), axis=-1, keepdims=True)
    return (x - mu) * jax.lax.rsqrt(var + eps) * gamma + beta


def _gelu(x):
    # tanh approximation (keeps everything on VPU/EUP)
    return 0.5 * x * (1.0 + jnp.tanh(0.7978845608028654 * (x + 0.044715 * x * x * x)))


def mtl_kernel(emb_ref, mbias_ref, wqkvo_ref, wffn_ref, whead_ref, vec_ref, out_ref):
    vec = vec_ref[...]                     # [8, 128]  packed biases / LN params / ua
    mbias = mbias_ref[...]                 # [B, S]    0 for valid, -1e9 for pad
    wqkvo = wqkvo_ref[...]                 # [H, 4H]   wq|wk|wv|wo
    wffn = wffn_ref[...]                   # [H, 2FF]  w1 | w2.T
    whead = whead_ref[...]                 # [H, 128]  wc in 0:C, wa in H:2H

    # ---- embedding layernorm (fused into kernel) ----
    x = _layernorm(emb_ref[...], vec[5:6, 0:H], vec[5:6, H:2 * H])   # [B*S, H]

    # ---- fused QKV(+O) projection: one 128-lane MXU push ----
    qkvo = jnp.dot(x, wqkvo, preferred_element_type=jnp.float32) + vec[0:1, :]  # [B*S, 4H]
    q = qkvo[:, 0:H].reshape(B, S, H)
    k = qkvo[:, H:2 * H].reshape(B, S, H)
    v = qkvo[:, 2 * H:3 * H].reshape(B, S, H)

    # ---- single-head self-attention (batched, no explicit transpose) ----
    scores = jnp.einsum('bqd,bkd->bqk', q, k,
                        preferred_element_type=jnp.float32) * _INV_SQRT_H       # [B, S, S]
    scores = scores + mbias[:, None, :]                    # mask over key positions
    scores = scores - jnp.max(scores, axis=-1, keepdims=True)
    p = jnp.exp(scores)
    p = p * pl.reciprocal(jnp.sum(p, axis=-1, keepdims=True), approx=True)

    ctx = jnp.einsum('bqk,bkd->bqd', p, v,
                     preferred_element_type=jnp.float32).reshape(B * S, H)       # [B*S, H]
    attn_out = (jnp.dot(ctx, wqkvo[:, 3 * H:4 * H], preferred_element_type=jnp.float32)
                + vec[0:1, 3 * H:4 * H])
    h = _layernorm(x + attn_out, vec[1:2, 0:H], vec[1:2, H:2 * H])               # [B*S, H]

    # ---- feed-forward ----
    ff = _gelu(jnp.dot(h, wffn[:, 0:FF], preferred_element_type=jnp.float32)
               + vec[2:3, 0:FF])                                                 # [B*S, FF]
    ff2 = (jnp.einsum('nf,hf->nh', ff, wffn[:, FF:2 * FF],
                      preferred_element_type=jnp.float32)
           + vec[2:3, FF:FF + H])                                                # [B*S, H]
    h2 = _layernorm(h + ff2, vec[1:2, 2 * H:3 * H], vec[1:2, 3 * H:4 * H])       # [B*S, H]

    # ---- RNNAttention-style head: attention pooling + linear classifier ----
    u = jnp.tanh(jnp.dot(h2, whead[:, H:2 * H], preferred_element_type=jnp.float32)
                 + vec[2:3, FF + H:FF + 2 * H])                                  # [B*S, H]
    u3 = u.reshape(B, S, H)
    a = jnp.sum(u3 * vec[4:5, 0:H], axis=-1)                                     # [B, S]
    a = a + mbias                                                                # mask pads
    a = a - jnp.max(a, axis=-1, keepdims=True)
    a = jnp.exp(a)
    a = a * pl.reciprocal(jnp.sum(a, axis=-1, keepdims=True), approx=True)       # [B, S]

    pooled = jnp.sum(h2.reshape(B, S, H) * a[:, :, None], axis=1)                # [B, H]

    # lane-dense classifier: logits land in lanes 0:C of a [B, 128] slab
    logits = (jnp.dot(pooled, whead, preferred_element_type=jnp.float32)
              + vec[3:4, :])                                                     # [B, 128]
    out_ref[...] = logits.astype(out_ref.dtype)


def init_params(key):
    ks = jax.random.split(key, 24)
    s = 0.02

    def mat(k, shape):
        return (s * jax.random.normal(k, shape)).astype(jnp.float32)

    p = {}
    p["word_emb"] = mat(ks[0], (VOCAB, H))
    p["type_emb"] = mat(ks[1], (NTYPES, H))
    p["pos_emb"] = mat(ks[2], (S, H))
    p["emb_g"] = jnp.ones((1, H), jnp.float32)
    p["emb_b"] = jnp.zeros((1, H), jnp.float32)

    p["wq"], p["wk"], p["wv"], p["wo"] = (mat(ks[i], (H, H)) for i in range(3, 7))
    p["bq"] = jnp.zeros((1, H), jnp.float32)
    p["bk"] = jnp.zeros((1, H), jnp.float32)
    p["bv"] = jnp.zeros((1, H), jnp.float32)
    p["bo"] = jnp.zeros((1, H), jnp.float32)
    p["g1"] = jnp.ones((1, H), jnp.float32)
    p["be1"] = jnp.zeros((1, H), jnp.float32)

    p["w1"] = mat(ks[7], (H, FF))
    p["b1"] = jnp.zeros((1, FF), jnp.float32)
    p["w2"] = mat(ks[8], (FF, H))
    p["b2"] = jnp.zeros((1, H), jnp.float32)
    p["g2"] = jnp.ones((1, H), jnp.float32)
    p["be2"] = jnp.zeros((1, H), jnp.float32)

    p["wa"] = mat(ks[9], (H, H))
    p["ba"] = jnp.zeros((1, H), jnp.float32)
    p["ua"] = mat(ks[10], (H, 1))
    p["wc"] = mat(ks[11], (H, C))
    p["bc"] = jnp.zeros((1, C), jnp.float32)
    return p


def pack_params(p):
    """Concatenate the 21 weight/bias tensors into 4 lane-dense slabs (done once, off the hot path)."""
    w_qkvo = jnp.concatenate([p["wq"], p["wk"], p["wv"], p["wo"]], axis=1)   # [H, 4H] = [32, 128]
    w_ffn = jnp.concatenate([p["w1"], p["w2"].T], axis=1)                    # [H, 2FF] = [32, 128]

    w_head = jnp.zeros((H, LANES), jnp.float32)
    w_head = w_head.at[:, 0:C].set(p["wc"])                                  # classifier → lanes 0:C
    w_head = w_head.at[:, H:2 * H].set(p["wa"])                              # pooling proj → lanes H:2H

    vecs = jnp.zeros((8, LANES), jnp.float32)
    vecs = vecs.at[0, 0:H].set(p["bq"][0])
    vecs = vecs.at[0, H:2 * H].set(p["bk"][0])
    vecs = vecs.at[0, 2 * H:3 * H].set(p["bv"][0])
    vecs = vecs.at[0, 3 * H:4 * H].set(p["bo"][0])
    vecs = vecs.at[1, 0:H].set(p["g1"][0])
    vecs = vecs.at[1, H:2 * H].set(p["be1"][0])
    vecs = vecs.at[1, 2 * H:3 * H].set(p["g2"][0])
    vecs = vecs.at[1, 3 * H:4 * H].set(p["be2"][0])
    vecs = vecs.at[2, 0:FF].set(p["b1"][0])
    vecs = vecs.at[2, FF:FF + H].set(p["b2"][0])
    vecs = vecs.at[2, FF + H:FF + 2 * H].set(p["ba"][0])
    vecs = vecs.at[3, 0:C].set(p["bc"][0])
    vecs = vecs.at[4, 0:H].set(p["ua"][:, 0])          # ua stored as a row → VPU mult + reduce
    vecs = vecs.at[5, 0:H].set(p["emb_g"][0])
    vecs = vecs.at[5, H:2 * H].set(p["emb_b"][0])

    return {"w_qkvo": w_qkvo, "w_ffn": w_ffn, "w_head": w_head, "vecs": vecs,
            "word_emb": p["word_emb"], "type_emb": p["type_emb"], "pos_emb": p["pos_emb"]}


def forward(packed, input_ids, attention_mask, token_type_ids):
    # ---- embedding gather in plain JAX (layernorm is fused into the kernel) ----
    emb = (packed["word_emb"][input_ids]
           + packed["type_emb"][token_type_ids]
           + packed["pos_emb"][None, :, :])                         # [B, S, H]
    emb = emb.reshape(B * S, H).astype(jnp.float32)                 # flatten batch into sublanes

    mbias = (1.0 - attention_mask.astype(jnp.float32)) * -1e9       # [B, S]

    vmem = pl.BlockSpec(memory_space=pltpu.MemorySpace.VMEM)
    out = pl.pallas_call(
        mtl_kernel,
        out_shape=jax.ShapeDtypeStruct((B, LANES), jnp.float32),    # lane-dense output slab
        in_specs=[vmem] * 6,
        out_specs=vmem,
    )(emb, mbias, packed["w_qkvo"], packed["w_ffn"], packed["w_head"], packed["vecs"])

    return out[:, :C]   # logits for OCEMOTION head, [B, C]


if __name__ == "__main__":
    key = jax.random.PRNGKey(0)
    pkey, dkey = jax.random.split(key)
    params = init_params(pkey)
    packed = pack_params(params)

    input_ids = jax.random.randint(dkey, (B, S), 0, VOCAB, dtype=jnp.int32)
    attention_mask = jnp.array([[1, 1, 1, 1, 1, 1, 0, 0],
                                [1, 1, 1, 1, 1, 1, 1, 1]], dtype=jnp.int32)
    token_type_ids = jnp.zeros((B, S), dtype=jnp.int32)

    logits = forward(packed, input_ids, attention_mask, token_type_ids)
    jax.block_until_ready(logits)
    assert logits.shape == (B, C) and jnp.all(jnp.isfinite(logits))
    print("KERNEL_OK")
</pallas_src>

<mosaic_0001>
module attributes {stable_mosaic.version = 11 : i64} {
  func.func @mtl_kernel(%arg0: memref<16x32xf32, #tpu.memory_space<vmem>>, %arg1: memref<2x8xf32, #tpu.memory_space<vmem>>, %arg2: memref<32x128xf32, #tpu.memory_space<vmem>>, %arg3: memref<32x128xf32, #tpu.memory_space<vmem>>, %arg4: memref<32x128xf32, #tpu.memory_space<vmem>>, %arg5: memref<8x128xf32, #tpu.memory_space<vmem>>, %arg6: memref<2x128xf32, #tpu.memory_space<vmem>>) attributes {dimension_semantics = [], scalar_prefetch = 0 : i64, scratch_operands = 0 : i64, tpu.core_type = #tpu.core_type<tc>} {
    %c0 = arith.constant 0 : index
    %c0_0 = arith.constant 0 : index
    %0 = vector.load %arg5[%c0, %c0_0] : memref<8x128xf32, #tpu.memory_space<vmem>>, vector<8x128xf32>
    %c0_1 = arith.constant 0 : index
    %c0_2 = arith.constant 0 : index
    %1 = vector.load %arg1[%c0_1, %c0_2] : memref<2x8xf32, #tpu.memory_space<vmem>>, vector<2x8xf32>
    %c0_3 = arith.constant 0 : index
    %c0_4 = arith.constant 0 : index
    %2 = vector.load %arg2[%c0_3, %c0_4] : memref<32x128xf32, #tpu.memory_space<vmem>>, vector<32x128xf32>
    %c0_5 = arith.constant 0 : index
    %c0_6 = arith.constant 0 : index
    %3 = vector.load %arg3[%c0_5, %c0_6] : memref<32x128xf32, #tpu.memory_space<vmem>>, vector<32x128xf32>
    %c0_7 = arith.constant 0 : index
    %c0_8 = arith.constant 0 : index
    %4 = vector.load %arg4[%c0_7, %c0_8] : memref<32x128xf32, #tpu.memory_space<vmem>>, vector<32x128xf32>
    %c0_9 = arith.constant 0 : index
    %c0_10 = arith.constant 0 : index
    %5 = vector.load %arg0[%c0_9, %c0_10] : memref<16x32xf32, #tpu.memory_space<vmem>>, vector<16x32xf32>
    %6 = vector.extract_strided_slice %0 {offsets = [5, 0], sizes = [1, 32], strides = [1, 1]} : vector<8x128xf32> to vector<1x32xf32>
    %7 = vector.extract_strided_slice %0 {offsets = [5, 32], sizes = [1, 32], strides = [1, 1]} : vector<8x128xf32> to vector<1x32xf32>
    %cst = arith.constant dense<0.000000e+00> : vector<16xf32>
    %8 = vector.multi_reduction <add>, %5, %cst [1] : vector<16x32xf32> to vector<16xf32>
    %9 = vector.shape_cast %8 : vector<16xf32> to vector<16x1xf32>
    %cst_11 = arith.constant 3.200000e+01 : f32
    %10 = vector.broadcast %cst_11 : f32 to vector<16x1xf32>
    %11 = arith.divf %9, %10 : vector<16x1xf32>
    %12 = vector.broadcast %11 : vector<16x1xf32> to vector<16x32xf32>
    %13 = arith.subf %5, %12 : vector<16x32xf32>
    %14 = vector.broadcast %11 : vector<16x1xf32> to vector<16x32xf32>
    %15 = arith.subf %5, %14 : vector<16x32xf32>
    %16 = arith.mulf %13, %15 : vector<16x32xf32>
    %cst_12 = arith.constant dense<0.000000e+00> : vector<16xf32>
    %17 = vector.multi_reduction <add>, %16, %cst_12 [1] : vector<16x32xf32> to vector<16xf32>
    %18 = vector.shape_cast %17 : vector<16xf32> to vector<16x1xf32>
    %cst_13 = arith.constant 3.200000e+01 : f32
    %19 = vector.broadcast %cst_13 : f32 to vector<16x1xf32>
    %20 = arith.divf %18, %19 : vector<16x1xf32>
    %21 = vector.broadcast %11 : vector<16x1xf32> to vector<16x32xf32>
    %22 = arith.subf %5, %21 : vector<16x32xf32>
    %cst_14 = arith.constant 9.99999996E-13 : f32
    %23 = vector.broadcast %cst_14 : f32 to vector<16x1xf32>
    %24 = arith.addf %20, %23 : vector<16x1xf32>
    %25 = math.rsqrt %24 : vector<16x1xf32>
    %26 = vector.broadcast %25 : vector<16x1xf32> to vector<16x32xf32>
    %27 = arith.mulf %22, %26 : vector<16x32xf32>
    %28 = vector.broadcast %6 : vector<1x32xf32> to vector<16x32xf32>
    %29 = arith.mulf %27, %28 : vector<16x32xf32>
    %30 = vector.broadcast %7 : vector<1x32xf32> to vector<16x32xf32>
    %31 = arith.addf %29, %30 : vector<16x32xf32>
    %cst_15 = arith.constant dense<0.000000e+00> : vector<16x128xf32>
    %32 = tpu.matmul %31, %2, %cst_15 {dimension_numbers = #tpu.dot_dimension_numbers<[1], [0], [0], [1], [0, 0, 1, 1], [], []>} : vector<16x32xf32>, vector<32x128xf32>, vector<16x128xf32> -> vector<16x128xf32>
    %33 = vector.extract_strided_slice %0 {offsets = [0, 0], sizes = [1, 128], strides = [1, 1]} : vector<8x128xf32> to vector<1x128xf32>
    %34 = vector.broadcast %33 : vector<1x128xf32> to vector<16x128xf32>
    %35 = arith.addf %32, %34 : vector<16x128xf32>
    %36 = vector.extract_strided_slice %35 {offsets = [0, 0], sizes = [16, 32], strides = [1, 1]} : vector<16x128xf32> to vector<16x32xf32>
    %37 = vector.shape_cast %36 : vector<16x32xf32> to vector<2x8x32xf32>
    %38 = vector.extract_strided_slice %35 {offsets = [0, 32], sizes = [16, 32], strides = [1, 1]} : vector<16x128xf32> to vector<16x32xf32>
    %39 = vector.shape_cast %38 : vector<16x32xf32> to vector<2x8x32xf32>
    %40 = vector.extract_strided_slice %35 {offsets = [0, 64], sizes = [16, 32], strides = [1, 1]} : vector<16x128xf32> to vector<16x32xf32>
    %41 = vector.shape_cast %40 : vector<16x32xf32> to vector<2x8x32xf32>
    "tpu.trace_start"() <{level = 10 : i32, message = "bqd,bkd->bqk"}> : () -> ()
    %cst_16 = arith.constant dense<0.000000e+00> : vector<2x8x8xf32>
    %42 = tpu.matmul %37, %39, %cst_16 {dimension_numbers = #tpu.dot_dimension_numbers<[2], [2], [1], [1], [0, 0, 0, 1, 1, 1], [0], [0]>} : vector<2x8x32xf32>, vector<2x8x32xf32>, vector<2x8x8xf32> -> vector<2x8x8xf32>
    "tpu.trace_stop"() : () -> ()
    %cst_17 = arith.constant 0.176776692 : f32
    %43 = vector.broadcast %cst_17 : f32 to vector<2x8x8xf32>
    %44 = arith.mulf %42, %43 : vector<2x8x8xf32>
    %45 = vector.shape_cast %1 : vector<2x8xf32> to vector<2x1x8xf32>
    %46 = vector.broadcast %45 : vector<2x1x8xf32> to vector<2x8x8xf32>
    %47 = arith.addf %44, %46 : vector<2x8x8xf32>
    %cst_18 = arith.constant dense<0xFF800000> : vector<2x8xf32>
    %48 = vector.multi_reduction <maximumf>, %47, %cst_18 [2] : vector<2x8x8xf32> to vector<2x8xf32>
    %49 = vector.shape_cast %48 : vector<2x8xf32> to vector<2x8x1xf32>
    %50 = vector.broadcast %49 : vector<2x8x1xf32> to vector<2x8x8xf32>
    %51 = arith.subf %47, %50 : vector<2x8x8xf32>
    %52 = math.exp %51 : vector<2x8x8xf32>
    %cst_19 = arith.constant dense<0.000000e+00> : vector<2x8xf32>
    %53 = vector.multi_reduction <add>, %52, %cst_19 [2] : vector<2x8x8xf32> to vector<2x8xf32>
    %54 = vector.shape_cast %53 : vector<2x8xf32> to vector<2x8x1xf32>
    %55 = tpu.reciprocal %54 {approx = true} : vector<2x8x1xf32> -> vector<2x8x1xf32>
    %56 = vector.broadcast %55 : vector<2x8x1xf32> to vector<2x8x8xf32>
    %57 = arith.mulf %52, %56 : vector<2x8x8xf32>
    "tpu.trace_start"() <{level = 10 : i32, message = "bqk,bkd->bqd"}> : () -> ()
    %cst_20 = arith.constant dense<0.000000e+00> : vector<2x8x32xf32>
    %58 = tpu.matmul %57, %41, %cst_20 {dimension_numbers = #tpu.dot_dimension_numbers<[2], [1], [1], [2], [0, 0, 0, 1, 1, 2], [0], [0]>} : vector<2x8x8xf32>, vector<2x8x32xf32>, vector<2x8x32xf32> -> vector<2x8x32xf32>
    "tpu.trace_stop"() : () -> ()
    %59 = vector.shape_cast %58 : vector<2x8x32xf32> to vector<16x32xf32>
    %60 = vector.extract_strided_slice %2 {offsets = [0, 96], sizes = [32, 32], strides = [1, 1]} : vector<32x128xf32> to vector<32x32xf32>
    %cst_21 = arith.constant dense<0.000000e+00> : vector<16x32xf32>
    %61 = tpu.matmul %59, %60, %cst_21 {dimension_numbers = #tpu.dot_dimension_numbers<[1], [0], [0], [1], [0, 0, 1, 1], [], []>} : vector<16x32xf32>, vector<32x32xf32>, vector<16x32xf32> -> vector<16x32xf32>
    %62 = vector.extract_strided_slice %0 {offsets = [0, 96], sizes = [1, 32], strides = [1, 1]} : vector<8x128xf32> to vector<1x32xf32>
    %63 = vector.broadcast %62 : vector<1x32xf32> to vector<16x32xf32>
    %64 = arith.addf %61, %63 : vector<16x32xf32>
    %65 = arith.addf %31, %64 : vector<16x32xf32>
    %66 = vector.extract_strided_slice %0 {offsets = [1, 0], sizes = [1, 32], strides = [1, 1]} : vector<8x128xf32> to vector<1x32xf32>
    %67 = vector.extract_strided_slice %0 {offsets = [1, 32], sizes = [1, 32], strides = [1, 1]} : vector<8x128xf32> to vector<1x32xf32>
    %cst_22 = arith.constant dense<0.000000e+00> : vector<16xf32>
    %68 = vector.multi_reduction <add>, %65, %cst_22 [1] : vector<16x32xf32> to vector<16xf32>
    %69 = vector.shape_cast %68 : vector<16xf32> to vector<16x1xf32>
    %cst_23 = arith.constant 3.200000e+01 : f32
    %70 = vector.broadcast %cst_23 : f32 to vector<16x1xf32>
    %71 = arith.divf %69, %70 : vector<16x1xf32>
    %72 = vector.broadcast %71 : vector<16x1xf32> to vector<16x32xf32>
    %73 = arith.subf %65, %72 : vector<16x32xf32>
    %74 = vector.broadcast %71 : vector<16x1xf32> to vector<16x32xf32>
    %75 = arith.subf %65, %74 : vector<16x32xf32>
    %76 = arith.mulf %73, %75 : vector<16x32xf32>
    %cst_24 = arith.constant dense<0.000000e+00> : vector<16xf32>
    %77 = vector.multi_reduction <add>, %76, %cst_24 [1] : vector<16x32xf32> to vector<16xf32>
    %78 = vector.shape_cast %77 : vector<16xf32> to vector<16x1xf32>
    %cst_25 = arith.constant 3.200000e+01 : f32
    %79 = vector.broadcast %cst_25 : f32 to vector<16x1xf32>
    %80 = arith.divf %78, %79 : vector<16x1xf32>
    %81 = vector.broadcast %71 : vector<16x1xf32> to vector<16x32xf32>
    %82 = arith.subf %65, %81 : vector<16x32xf32>
    %cst_26 = arith.constant 9.99999996E-13 : f32
    %83 = vector.broadcast %cst_26 : f32 to vector<16x1xf32>
    %84 = arith.addf %80, %83 : vector<16x1xf32>
    %85 = math.rsqrt %84 : vector<16x1xf32>
    %86 = vector.broadcast %85 : vector<16x1xf32> to vector<16x32xf32>
    %87 = arith.mulf %82, %86 : vector<16x32xf32>
    %88 = vector.broadcast %66 : vector<1x32xf32> to vector<16x32xf32>
    %89 = arith.mulf %87, %88 : vector<16x32xf32>
    %90 = vector.broadcast %67 : vector<1x32xf32> to vector<16x32xf32>
    %91 = arith.addf %89, %90 : vector<16x32xf32>
    %92 = vector.extract_strided_slice %3 {offsets = [0, 0], sizes = [32, 64], strides = [1, 1]} : vector<32x128xf32> to vector<32x64xf32>
    %cst_27 = arith.constant dense<0.000000e+00> : vector<16x64xf32>
    %93 = tpu.matmul %91, %92, %cst_27 {dimension_numbers = #tpu.dot_dimension_numbers<[1], [0], [0], [1], [0, 0, 1, 1], [], []>} : vector<16x32xf32>, vector<32x64xf32>, vector<16x64xf32> -> vector<16x64xf32>
    %94 = vector.extract_strided_slice %0 {offsets = [2, 0], sizes = [1, 64], strides = [1, 1]} : vector<8x128xf32> to vector<1x64xf32>
    %95 = vector.broadcast %94 : vector<1x64xf32> to vector<16x64xf32>
    %96 = arith.addf %93, %95 : vector<16x64xf32>
    %cst_28 = arith.constant 5.000000e-01 : f32
    %97 = vector.broadcast %cst_28 : f32 to vector<16x64xf32>
    %98 = arith.mulf %97, %96 : vector<16x64xf32>
    %cst_29 = arith.constant 4.471500e-02 : f32
    %99 = vector.broadcast %cst_29 : f32 to vector<16x64xf32>
    %100 = arith.mulf %99, %96 : vector<16x64xf32>
    %101 = arith.mulf %100, %96 : vector<16x64xf32>
    %102 = arith.mulf %101, %96 : vector<16x64xf32>
    %103 = arith.addf %96, %102 : vector<16x64xf32>
    %cst_30 = arith.constant 0.797884583 : f32
    %104 = vector.broadcast %cst_30 : f32 to vector<16x64xf32>
    %105 = arith.mulf %104, %103 : vector<16x64xf32>
    %106 = math.tanh %105 : vector<16x64xf32>
    %cst_31 = arith.constant 1.000000e+00 : f32
    %107 = vector.broadcast %cst_31 : f32 to vector<16x64xf32>
    %108 = arith.addf %107, %106 : vector<16x64xf32>
    %109 = arith.mulf %98, %108 : vector<16x64xf32>
    %110 = vector.extract_strided_slice %3 {offsets = [0, 64], sizes = [32, 64], strides = [1, 1]} : vector<32x128xf32> to vector<32x64xf32>
    "tpu.trace_start"() <{level = 10 : i32, message = "nf,hf->nh"}> : () -> ()
    %cst_32 = arith.constant dense<0.000000e+00> : vector<16x32xf32>
    %111 = tpu.matmul %109, %110, %cst_32 {dimension_numbers = #tpu.dot_dimension_numbers<[1], [1], [0], [0], [0, 0, 1, 0], [], []>} : vector<16x64xf32>, vector<32x64xf32>, vector<16x32xf32> -> vector<16x32xf32>
    "tpu.trace_stop"() : () -> ()
    %112 = vector.extract_strided_slice %0 {offsets = [2, 64], sizes = [1, 32], strides = [1, 1]} : vector<8x128xf32> to vector<1x32xf32>
    %113 = vector.broadcast %112 : vector<1x32xf32> to vector<16x32xf32>
    %114 = arith.addf %111, %113 : vector<16x32xf32>
    %115 = arith.addf %91, %114 : vector<16x32xf32>
    %116 = vector.extract_strided_slice %0 {offsets = [1, 64], sizes = [1, 32], strides = [1, 1]} : vector<8x128xf32> to vector<1x32xf32>
    %117 = vector.extract_strided_slice %0 {offsets = [1, 96], sizes = [1, 32], strides = [1, 1]} : vector<8x128xf32> to vector<1x32xf32>
    %cst_33 = arith.constant dense<0.000000e+00> : vector<16xf32>
    %118 = vector.multi_reduction <add>, %115, %cst_33 [1] : vector<16x32xf32> to vector<16xf32>
    %119 = vector.shape_cast %118 : vector<16xf32> to vector<16x1xf32>
    %cst_34 = arith.constant 3.200000e+01 : f32
    %120 = vector.broadcast %cst_34 : f32 to vector<16x1xf32>
    %121 = arith.divf %119, %120 : vector<16x1xf32>
    %122 = vector.broadcast %121 : vector<16x1xf32> to vector<16x32xf32>
    %123 = arith.subf %115, %122 : vector<16x32xf32>
    %124 = vector.broadcast %121 : vector<16x1xf32> to vector<16x32xf32>
    %125 = arith.subf %115, %124 : vector<16x32xf32>
    %126 = arith.mulf %123, %125 : vector<16x32xf32>
    %cst_35 = arith.constant dense<0.000000e+00> : vector<16xf32>
    %127 = vector.multi_reduction <add>, %126, %cst_35 [1] : vector<16x32xf32> to vector<16xf32>
    %128 = vector.shape_cast %127 : vector<16xf32> to vector<16x1xf32>
    %cst_36 = arith.constant 3.200000e+01 : f32
    %129 = vector.broadcast %cst_36 : f32 to vector<16x1xf32>
    %130 = arith.divf %128, %129 : vector<16x1xf32>
    %131 = vector.broadcast %121 : vector<16x1xf32> to vector<16x32xf32>
    %132 = arith.subf %115, %131 : vector<16x32xf32>
    %cst_37 = arith.constant 9.99999996E-13 : f32
    %133 = vector.broadcast %cst_37 : f32 to vector<16x1xf32>
    %134 = arith.addf %130, %133 : vector<16x1xf32>
    %135 = math.rsqrt %134 : vector<16x1xf32>
    %136 = vector.broadcast %135 : vector<16x1xf32> to vector<16x32xf32>
    %137 = arith.mulf %132, %136 : vector<16x32xf32>
    %138 = vector.broadcast %116 : vector<1x32xf32> to vector<16x32xf32>
    %139 = arith.mulf %137, %138 : vector<16x32xf32>
    %140 = vector.broadcast %117 : vector<1x32xf32> to vector<16x32xf32>
    %141 = arith.addf %139, %140 : vector<16x32xf32>
    %142 = vector.extract_strided_slice %4 {offsets = [0, 32], sizes = [32, 32], strides = [1, 1]} : vector<32x128xf32> to vector<32x32xf32>
    %cst_38 = arith.constant dense<0.000000e+00> : vector<16x32xf32>
    %143 = tpu.matmul %141, %142, %cst_38 {dimension_numbers = #tpu.dot_dimension_numbers<[1], [0], [0], [1], [0, 0, 1, 1], [], []>} : vector<16x32xf32>, vector<32x32xf32>, vector<16x32xf32> -> vector<16x32xf32>
    %144 = vector.extract_strided_slice %0 {offsets = [2, 96], sizes = [1, 32], strides = [1, 1]} : vector<8x128xf32> to vector<1x32xf32>
    %145 = vector.broadcast %144 : vector<1x32xf32> to vector<16x32xf32>
    %146 = arith.addf %143, %145 : vector<16x32xf32>
    %147 = math.tanh %146 : vector<16x32xf32>
    %148 = vector.shape_cast %147 : vector<16x32xf32> to vector<2x8x32xf32>
    %149 = vector.extract_strided_slice %0 {offsets = [4, 0], sizes = [1, 32], strides = [1, 1]} : vector<8x128xf32> to vector<1x32xf32>
    %150 = vector.shape_cast %149 : vector<1x32xf32> to vector<1x1x32xf32>
    %151 = vector.broadcast %150 : vector<1x1x32xf32> to vector<2x8x32xf32>
    %152 = arith.mulf %148, %151 : vector<2x8x32xf32>
    %cst_39 = arith.constant dense<0.000000e+00> : vector<2x8xf32>
    %153 = vector.multi_reduction <add>, %152, %cst_39 [2] : vector<2x8x32xf32> to vector<2x8xf32>
    %154 = arith.addf %153, %1 : vector<2x8xf32>
    %cst_40 = arith.constant dense<0xFF800000> : vector<2xf32>
    %155 = vector.multi_reduction <maximumf>, %154, %cst_40 [1] : vector<2x8xf32> to vector<2xf32>
    %156 = vector.shape_cast %155 : vector<2xf32> to vector<2x1xf32>
    %157 = vector.broadcast %156 : vector<2x1xf32> to vector<2x8xf32>
    %158 = arith.subf %154, %157 : vector<2x8xf32>
    %159 = math.exp %158 : vector<2x8xf32>
    %cst_41 = arith.constant dense<0.000000e+00> : vector<2xf32>
    %160 = vector.multi_reduction <add>, %159, %cst_41 [1] : vector<2x8xf32> to vector<2xf32>
    %161 = vector.shape_cast %160 : vector<2xf32> to vector<2x1xf32>
    %162 = tpu.reciprocal %161 {approx = true} : vector<2x1xf32> -> vector<2x1xf32>
    %163 = vector.broadcast %162 : vector<2x1xf32> to vector<2x8xf32>
    %164 = arith.mulf %159, %163 : vector<2x8xf32>
    %165 = vector.shape_cast %141 : vector<16x32xf32> to vector<2x8x32xf32>
    %166 = vector.shape_cast %164 : vector<2x8xf32> to vector<2x8x1xf32>
    %167 = vector.broadcast %166 : vector<2x8x1xf32> to vector<2x8x32xf32>
    %168 = arith.mulf %165, %167 : vector<2x8x32xf32>
    %cst_42 = arith.constant dense<0.000000e+00> : vector<2x32xf32>
    %169 = vector.multi_reduction <add>, %168, %cst_42 [1] : vector<2x8x32xf32> to vector<2x32xf32>
    %cst_43 = arith.constant dense<0.000000e+00> : vector<2x128xf32>
    %170 = tpu.matmul %169, %4, %cst_43 {dimension_numbers = #tpu.dot_dimension_numbers<[1], [0], [0], [1], [0, 0, 1, 1], [], []>} : vector<2x32xf32>, vector<32x128xf32>, vector<2x128xf32> -> vector<2x128xf32>
    %171 = vector.extract_strided_slice %0 {offsets = [3, 0], sizes = [1, 128], strides = [1, 1]} : vector<8x128xf32> to vector<1x128xf32>
    %172 = vector.broadcast %171 : vector<1x128xf32> to vector<2x128xf32>
    %173 = arith.addf %170, %172 : vector<2x128xf32>
    %c0_44 = arith.constant 0 : index
    %c0_45 = arith.constant 0 : index
    %174 = vector.load %arg6[%c0_44, %c0_45] : memref<2x128xf32, #tpu.memory_space<vmem>>, vector<2x128xf32>
    tpu.vector_store %arg6[%c0_44, %c0_45], %173 {strides = array<i32>} : memref<2x128xf32, #tpu.memory_space<vmem>>, vector<2x128xf32>,
    return
  }
}

</mosaic_0001>

<bundles_post_ra>
// kernel: tpu_custom_call.1
= control target key start
LH: loop header
LB: loop body
LE: loop exit
PB: predicated region body
PF: predicated region fallthrough
CT: control target
= control target key end

     0   :  { %11 = vsyncpa [#allocation3], 0  ;;  %s1331_s0 = inlined_call_operand.hbm [shape: f32[16,32], index: 0, kind: input, shape index: {}]   ;;  %s1332_s1 = inlined_call_operand.hbm [shape: f32[2,8], index: 1, kind: input, shape index: {}]   ;;  %s1333_s2 = inlined_call_operand.hbm [shape: f32[32,128], index: 2, kind: input, shape index: {}]   ;;  %s1334_s3 = inlined_call_operand.hbm [shape: f32[32,128], index: 3, kind: input, shape index: {}]   ;;  %s1335_s4 = inlined_call_operand.hbm [shape: f32[32,128], index: 4, kind: input, shape index: {}]   ;;  %s1336_s5 = inlined_call_operand.hbm [shape: f32[8,128], index: 5, kind: input, shape index: {}]   ;;  %s1337_s6 = inlined_call_operand.hbm [shape: f32[2,128], index: 6, kind: output, shape index: {}]  }
   0x1   :  { %12 = vsyncpa [#allocation6], 0 }
   0x2   :  { %13 = vsyncpa [#allocation9], 0 }
   0x3   :  { %14 = vsyncpa [#allocation12], 0  ;;  %s34_s23 = sshll.u32 %s1332_s1, 4  ;;  %s35_s23 = int_to_ptr.hbm [resolvable:$true] %s34_s23 }
   0x4   :  { %15 = vsyncpa [#allocation4], 0  ;;  %s1101_s24 = smov [#allocation5]   ;;  %s57_s28 = sshll.u32 %s1334_s3, 4  ;;  %s58_s28 = int_to_ptr.hbm [resolvable:$true] %s57_s28 }
   0x5   :  { %s36_s25 = sshll.u32 %s1101_s24, 4  ;;  %s1102_s29 = smov [#allocation8]   ;;  %s37_s25 = int_to_ptr.vmem [resolvable:$true] %s36_s25 }
   0x6   :  { %39 = dma.hbm_to_vmem [thread:$0]  %s35_s23, 32, %s37_s25, [#allocation6]  }
   0x7   :  { %s59_s30 = sshll.u32 %s1102_s29, 4  ;;  %s20_s9 = sshll.u32 %s1331_s0, 4  ;;  %s60_s30 = int_to_ptr.vmem [resolvable:$true] %s59_s30  ;;  %s21_s9 = int_to_ptr.hbm [resolvable:$true] %s20_s9 }
   0x8   :  { %s1103_s1 = smov 128   ;;  %s1104_s10 = smov 8  }
   0x9   :  { %65 = dma.hbm_to_vmem [thread:$0]  %s58_s28, 512, %s60_s30, [#allocation9], %s1103_s1, %s1103_s1, %s1104_s10  }
   0xa   :  { %s44_s13 = sshll.u32 %s1333_s2, 4  ;;  %s1105_s14 = smov [#allocation2]   ;;  %s45_s13 = int_to_ptr.hbm [resolvable:$true] %s44_s13 }
   0xb   :  { %s22_s15 = sshll.u32 %s1105_s14, 4  ;;  %s1106_s3 = smov [#allocation7]   ;;  %s23_s15 = int_to_ptr.vmem [resolvable:$true] %s22_s15 }
   0xc   :  { %28 = dma.hbm_to_vmem [thread:$0]  %s21_s9, 256, %s23_s15, [#allocation3], %s1103_s1, %s1103_s1, %s1104_s10  }
   0xd   :  { %s46_s16 = sshll.u32 %s1106_s3, 4  ;;  %s70_s0 = sshll.u32 %s1335_s4, 4  ;;  %s47_s16 = int_to_ptr.vmem [resolvable:$true] %s46_s16  ;;  %s71_s0 = int_to_ptr.hbm [resolvable:$true] %s70_s0 }
   0xe   :  { %52 = dma.hbm_to_vmem [thread:$0]  %s45_s13, 512, %s47_s16, [#allocation6], %s1103_s1, %s1103_s1, %s1104_s10  }
   0xf   :  { %s84_s21 = sshll.u32 %s1336_s5, 4  ;;  %s1107_s22 = smov [#allocation10]   ;;  %s85_s21 = int_to_ptr.hbm [resolvable:$true] %s84_s21 }
  0x10   :  { %s72_s2 = sshll.u32 %s1107_s22, 4  ;;  %s1108_s23 = smov [#allocation11]   ;;  %s73_s2 = int_to_ptr.vmem [resolvable:$true] %s72_s2 }
  0x11   :  { %78 = dma.hbm_to_vmem [thread:$0]  %s71_s0, 512, %s73_s2, [#allocation9], %s1103_s1, %s1103_s1, %s1104_s10  }
  0x12   :  { %s86_s24 = sshll.u32 %s1108_s23, 4  ;;  %s87_s24 = int_to_ptr.vmem [resolvable:$true] %s86_s24 }
  0x13   :  { %89 = dma.hbm_to_vmem [thread:$0]  %s85_s21, 128, %s87_s24, [#allocation12]  }
  0x14   :  { %1091 = dma.done.wait [#allocation3], 256  }
  0x15   :  { %1092 = vsyncadd [#allocation3], 4294967040 }
  0x16   :  { %1093 = dma.done.wait [#allocation6], 544  }
  0x17   :  { %1094 = vsyncadd [#allocation6], 4294966752 }
  0x18   :  { %1095 = dma.done.wait [#allocation9], 1024  }
  0x19   :  { %1096 = vsyncadd [#allocation9], 4294966272 }
  0x1a   :  { %1097 = dma.done.wait [#allocation12], 128  }
  0x1b   :  { %1098 = vsyncadd [#allocation12], 4294967168  ;;  %vm130_vm0 = vcmask 261120   ;;  %v128_v0 = vld [vmem:[#allocation2] sm:$0xff]  ;;  %v129_v2 = vld [vmem:[#allocation2 + $0x8] sm:$0xff]  ;;  %v1109_v4 = vmov 32.0  }
  0x1c   :  { %v131_v1 = vsel %vm130_vm0, %v128_v0, 0.0  ;;  %v134_v3 = vsel %vm130_vm0, %v129_v2, 0.0  ;;  %887 = vrcp.f32 %v1109_v4  ;;  %v1170_v7 = vld [vmem:[#allocation11] sm:$0xff]  ;;  %s1110_s4 = smov 96   ;;  %v1183_v23 = vld [vmem:[#allocation7 + $0x18] sm:$0xff]  ;;  %v1186_v24 = vld [vmem:[#allocation7 + $0x10] sm:$0xff] }
  0x1d   :  { %132 = vadd.xlane.f32.xlu0 %v131_v1  ;;  %v1173_v8 = vperm.slane %v1170_v7, 5  ;;  %210 = vmatpush.msra.mxu0 %v1183_v23  ;;  %v1189_v25 = vld [vmem:[#allocation7 + $0x8] sm:$0xff]  ;;  %v1192_v26 = vld [vmem:[#allocation7] sm:$0xff]  ;;  %v863_v27 = vpack.i.bf16 %v1186_v24, %v1183_v23  ;;  %v191_v56 = vperm.slane %v1170_v7, 0  ;;  %s1111_s5 = smov 64   ;;  %vm285_vm8 = vcmask 64512  }
  0x1e   :  { %v868_v31 = vpack.i.bf16 %v1192_v26, %v1189_v25  ;;  %s1112_s25 = smov 32   ;;  %vm528_vm15 = vcmask 523264   ;;  %s1114_s26 = smov [#allocation13]  }
  0x1f   :  { %186 = vrot.lane.b32.xlu2 %v1173_v8, %s1110_s4  ;;  %211 = vmatpush.msra.mxu0 %v1186_v24  ;;  %s809_s27 = sshll.u32 %s1114_s26, 4  ;;  %s811_s30 = sshll.u32 %s1337_s6, 4  ;;  %s810_s27 = int_to_ptr.vmem [resolvable:$true] %s809_s27  ;;  %s812_s30 = int_to_ptr.hbm [resolvable:$true] %s811_s30 }
  0x21   :  { %212 = vmatpush.msra.mxu0 %v1189_v25 }
  0x22   :  { %v888_v5 = vpop.eup %887 }
  0x23   :  { %v138_v6 = vmul.f32 32.0, %v888_v5  ;;  %vm142_vm1 = vweird.f32 %v888_v5  ;;  %213 = vmatpush.msra.mxu0 %v1192_v26 }
  0x25   :  { %135 = vadd.xlane.f32.xlu0 %v134_v3  ;;  %v139_v9 = vsub.f32 1.0, %v138_v6 }
  0x27   :  { %v140_v10 = vmul.f32 %v888_v5, %v139_v9 }
  0x29   :  { %v141_v11 = vadd.f32 %v888_v5, %v140_v10 }
  0x2b   :  { %v1177_v12 = vsel %vm142_vm1, %v888_v5, %v141_v11 }
  0x79   :  { %v187_v47 = vpop.permute.xlu2 %186 }
  0x90   :  { %v133_v13 = vpop.xlane.xlu0 %132 }
  0x91   :  { %v144_v14 = vmul.f32 %v1177_v12, %v133_v13 }
  0x93   :  { %v146_v15 = vsub.f32 %v128_v0, %v144_v14  ;;  %v1219_v0 = vld [vmem:[#allocation5] sm:$0x3] }
  0x94   :  { %v279_v1 = vperm.slane %v1219_v0, 0  ;;  %v278_v6 = vrot.slane %v1219_v0, 1 }
  0x95   :  { %v148_v16 = vmul.f32 %v146_v15, %v146_v15 }
  0x97   :  { %v150_v17 = vsel %vm130_vm0, %v148_v16, 0.0 }
  0x98   :  { %151 = vadd.xlane.f32.xlu1 %v150_v17  ;;  %v136_v18 = vpop.xlane.xlu0 %135 }
  0x99   :  { %v145_v19 = vmul.f32 %v1177_v12, %v136_v18 }
  0x9b   :  { %v147_v20 = vsub.f32 %v129_v2, %v145_v19 }
  0x9d   :  { %v149_v21 = vmul.f32 %v147_v20, %v147_v20 }
  0x9f   :  { %v153_v22 = vsel %vm130_vm0, %v149_v21, 0.0 }
  0xa0   :  { %154 = vadd.xlane.f32.xlu1 %v153_v22 }
 0x10b   :  { %v152_v28 = vpop.xlane.xlu1 %151 }
 0x10c   :  { %v156_v29 = vmul.f32 %v152_v28, %v1177_v12 }
 0x10e   :  { %v158_v30 = vadd.f32 1e-12, %v156_v29 }
 0x110   :  { %889 = vrsqrt.f32 %v158_v30  ;;  %vm166_vm3 = vweird.f32 %v158_v30 }
 0x113   :  { %v155_v32 = vpop.xlane.xlu1 %154 }
 0x114   :  { %v157_v33 = vmul.f32 %v155_v32, %v1177_v12 }
 0x116   :  { %v890_v34 = vpop.eup %889  ;;  %v159_v35 = vadd.f32 1e-12, %v157_v33 }
 0x117   :  { %v161_v36 = vmul.f32 %v890_v34, %v158_v30  ;;  %vm167_vm2 = vweird.f32 %v890_v34 }
 0x118   :  { %891 = vrsqrt.f32 %v159_v35  ;;  %vm168_vm4 = vmor %vm166_vm3, %vm167_vm2  ;;  %vm176_vm6 = vweird.f32 %v159_v35 }
 0x119   :  { %v162_v37 = vmul.f32 %v890_v34, %v161_v36 }
 0x11b   :  { %v163_v38 = vmul.f32 0.5, %v162_v37 }
 0x11d   :  { %v164_v39 = vsub.f32 1.5, %v163_v38 }
 0x11e   :  { %v892_v40 = vpop.eup %891 }
 0x11f   :  { %v165_v41 = vmul.f32 %v890_v34, %v164_v39  ;;  %v171_v42 = vmul.f32 %v892_v40, %v159_v35  ;;  %vm177_vm5 = vweird.f32 %v892_v40 }
 0x120   :  { %vm178_vm7 = vmor %vm176_vm6, %vm177_vm5 }
 0x121   :  { %v172_v43 = vmul.f32 %v892_v40, %v171_v42  ;;  %v169_v44 = vsel %vm168_vm4, %v890_v34, %v165_v41 }
 0x122   :  { %v180_v45 = vmul.f32 %v169_v44, %v146_v15 }
 0x123   :  { %v173_v46 = vmul.f32 0.5, %v172_v43 }
 0x124   :  { %v183_v48 = vmul.f32 %v1173_v8, %v180_v45 }
 0x125   :  { %v174_v49 = vsub.f32 1.5, %v173_v46 }
 0x126   :  { %v1202_v50 = vadd.f32 %v187_v47, %v183_v48  ;;  %v1248_v48 = vperm.slane %v1170_v7, 1 }
 0x127   :  { %v175_v51 = vmul.f32 %v892_v40, %v174_v49 }
 0x128   :  { %824 = vmatmul.msk.f32.vlgmr.msra.gmra.mxu0 %vm130_vm0, %v1202_v50 }
 0x129   :  { %v179_v52 = vsel %vm178_vm7, %v892_v40, %v175_v51  ;;  %vm710_vm7 = vcmask 1041409  }
 0x12a   :  { %v181_v53 = vmul.f32 %v179_v52, %v147_v20 }
 0x12c   :  { %v184_v54 = vmul.f32 %v1173_v8, %v181_v53  ;;  %v280_v8 = vperm.slane %v278_v6, 0 }
 0x12e   :  { %v1207_v55 = vadd.f32 %v187_v47, %v184_v54 }
 0x130   :  { %825 = vmatmul.msk.f32.gmra.mxu0 %vm130_vm0, %v1207_v55 }
 0x1a5   :  { %v215_v57 = vpop.f32.mrf.mxu0 }
 0x1a6   :  { %v216_v58 = vadd.f32 %v215_v57, %v191_v56 }
 0x1a8   :  { %222 = vrot.lane.b32.xlu2 %v216_v58, %s1110_s4 }
 0x1ad   :  { %v218_v59 = vpop.f32.mrf.mxu0 }
 0x1ae   :  { %v219_v60 = vadd.f32 %v218_v59, %v191_v56  ;;  %v123_v59 = vld [vmem:[#allocation8 + $0x18] sm:$0xff] }
 0x1b0   :  { %249 = vrot.lane.b32.xlu0 %v219_v60, %s1110_s4 }
 0x1b8   :  { %308 = vrot.lane.b32.xlu0 %v216_v58, %s1111_s5 }
 0x1c0   :  { %864 = vrot.lane.b32.xlu0 %v863_v27, %s1112_s25 }
 0x1c8   :  { %869 = vrot.lane.b32.xlu0 %v868_v31, %s1112_s25 }
 0x202   :  { %v223_v61 = vpop.permute.xlu2 %222 }
 0x203   :  { %826 = vmatpush.xpose.msk.msra.mxu1 %vm130_vm0, %v223_v61  ;;  %v121_v61 = vld [vmem:[#allocation8 + $0x8] sm:$0xff] }
 0x206   :  { %827 = vmatmul.msk.f32.vlgmr.msra.gmra.mxu1 %vm130_vm0, %v216_v58 }
 0x222   :  { %v250_v62 = vpop.permute.xlu0 %249 }
 0x223   :  { %828 = vmatpush.xpose.msk.msra.mxu2 %vm130_vm0, %v250_v62  ;;  %v120_v62 = vld [vmem:[#allocation8] sm:$0xff] }
 0x226   :  { %829 = vmatmul.msk.f32.vlgmr.msra.gmra.mxu2 %vm130_vm0, %v219_v60 }
 0x227   :  { %483 = vmatpush.msrb.mxu2 %v123_v59 }
 0x22a   :  { %v309_v63 = vpop.permute.xlu0 %308 }
 0x22b   :  { %329 = vmatpush.msra.mxu3 %v309_v63 }
 0x232   :  { %v865_v29 = vpop.permute.xlu0 %864 }
 0x233   :  { %v866_v30 = vunpack.i.l.bf16 %v865_v29  ;;  %v867_v25 = vunpack.i.h.bf16 %v865_v29 }
 0x235   :  { %398 = vmatpush.msrb.mxu1 %v866_v30 }
 0x237   :  { %399 = vmatpush.msrb.mxu1 %v867_v25 }
 0x23a   :  { %v870_v26 = vpop.permute.xlu0 %869 }
 0x23b   :  { %v871_v31 = vunpack.i.l.bf16 %v870_v26  ;;  %v872_v36 = vunpack.i.h.bf16 %v870_v26 }
 0x23d   :  { %400 = vmatpush.msrb.mxu1 %v871_v31 }
 0x23f   :  { %401 = vmatpush.msrb.mxu1 %v872_v36 }
 0x283   :  { %v245_v2 = vpop.f32.mrf.mxu1 }
 0x284   :  { %v275_v3 = vmul.f32 0.17677669, %v245_v2 }
 0x286   :  { %v283_v4 = vadd.f32 %v279_v1, %v275_v3 }
 0x288   :  { %v286_v5 = vsel %vm285_vm8, %v283_v4, -inf }
 0x289   :  { %287 = vmax.xlane.f32.xlu1 %v286_v5 }
 0x2a9   :  { %v272_v9 = vpop.f32.mrf.mxu2 }
 0x2aa   :  { %v276_v10 = vmul.f32 0.17677669, %v272_v9 }
 0x2ac   :  { %v284_v11 = vadd.f32 %v280_v8, %v276_v10 }
 0x2ae   :  { %v289_v13 = vsel %vm285_vm8, %v284_v11, -inf }
 0x2af   :  { %290 = vmax.xlane.f32.xlu2 %v289_v13 }
 0x2c7   :  { %377 = vrot.lane.b32.xlu2 %v191_v56, %s1112_s25 }
 0x2fc   :  { %v288_v14 = vpop.xlane.xlu1 %287 }
 0x2fd   :  { %v292_v15 = vsub.f32 %v283_v4, %v288_v14 }
 0x2ff   :  { %v294_v16 = vmul.f32 1.442695, %v292_v15 }
 0x301   :  { %893 = vpow2.f32 %v294_v16 }
 0x307   :  { %v894_v17 = vpop.eup %893 }
 0x308   :  { %v298_v18 = vsel %vm285_vm8, %v894_v17, 0.0 }
 0x309   :  { %299 = vadd.xlane.f32.xlu1 %v298_v18 }
 0x322   :  { %v291_v19 = vpop.xlane.xlu2 %290 }
 0x323   :  { %v293_v20 = vsub.f32 %v284_v11, %v291_v19 }
 0x325   :  { %v296_v21 = vmul.f32 1.442695, %v293_v20 }
 0x327   :  { %895 = vpow2.f32 %v296_v21 }
 0x32a   :  { %v378_v39 = vpop.permute.xlu2 %377 }
 0x32d   :  { %v896_v22 = vpop.eup %895 }
 0x32e   :  { %v301_v28 = vsel %vm285_vm8, %v896_v22, 0.0 }
 0x32f   :  { %302 = vadd.xlane.f32.xlu1 %v301_v28 }
 0x348   :  { %334 = vrot.lane.b32.xlu1 %v219_v60, %s1111_s5  ;;  %v122_v60 = vld [vmem:[#allocation8 + $0x10] sm:$0xff] }
 0x349   :  { %484 = vmatpush.msrb.mxu2 %v122_v60 }
 0x34b   :  { %485 = vmatpush.msrb.mxu2 %v121_v61 }
 0x34d   :  { %486 = vmatpush.msrb.mxu2 %v120_v62 }
 0x37c   :  { %v300_v23 = vpop.xlane.xlu1 %299 }
 0x37d   :  { %897 = vrcp.f32 %v300_v23 }
 0x383   :  { %v898_v24 = vpop.eup %897 }
 0x384   :  { %v306_v27 = vmul.f32 %v898_v24, %v894_v17  ;;  %v1267_v17 = vperm.slane %v1170_v7, 2 }
 0x386   :  { %830 = vmatmul.msk.f32.vlgmr.msra.gmra.mxu3 %vm285_vm8, %v306_v27 }
 0x3a2   :  { %v303_v32 = vpop.xlane.xlu1 %302 }
 0x3a3   :  { %899 = vrcp.f32 %v303_v32 }
 0x3a9   :  { %v900_v33 = vpop.eup %899 }
 0x3aa   :  { %v307_v35 = vmul.f32 %v900_v33, %v896_v22 }
 0x3ba   :  { %v335_v34 = vpop.permute.xlu1 %334 }
 0x3bb   :  { %355 = vmatpush.msrb.mxu3 %v335_v34 }
 0x3bc   :  { %831 = vmatmul.msk.f32.vlgmr.msrb.gmra.mxu3 %vm285_vm8, %v307_v35  ;;  %vm713_vm8 = vcmask 58368  }
 0x409   :  { %v331_v37 = vpop.f32.mrf.mxu3 }
 0x40a   :  { %832 = vmatmul.msk.f32.vlgmr.msrb.gmra.mxu1 %vm130_vm0, %v331_v37 }
 0x43f   :  { %v357_v38 = vpop.f32.mrf.mxu3 }
 0x440   :  { %833 = vmatmul.msk.f32.gmra.mxu1 %vm130_vm0, %v357_v38 }
 0x487   :  { %v403_v40 = vpop.f32.mrf.mxu1 }
 0x488   :  { %v404_v41 = vadd.f32 %v403_v40, %v378_v39 }
 0x48a   :  { %v409_v42 = vadd.f32 %v404_v41, %v1202_v50 }
 0x48c   :  { %v411_v43 = vsel %vm130_vm0, %v409_v42, 0.0 }
 0x48d   :  { %412 = vadd.xlane.f32.xlu0 %v411_v43 }
 0x4bd   :  { %v406_v44 = vpop.f32.mrf.mxu1 }
 0x4be   :  { %v407_v45 = vadd.f32 %v406_v44, %v378_v39 }
 0x4c0   :  { %v410_v46 = vadd.f32 %v407_v45, %v1207_v55 }
 0x4c2   :  { %v414_v47 = vsel %vm130_vm0, %v410_v46, 0.0 }
 0x4c3   :  { %415 = vadd.xlane.f32.xlu1 %v414_v47 }
 0x4dc   :  { %459 = vrot.lane.b32.xlu1 %v1248_v48, %s1110_s4 }
 0x4e4   :  { %516 = vrot.lane.b32.xlu1 %v120_v62, %s1111_s5 }
 0x500   :  { %v413_v49 = vpop.xlane.xlu0 %412 }
 0x501   :  { %v417_v51 = vmul.f32 %v413_v49, %v1177_v12 }
 0x503   :  { %v419_v50 = vsub.f32 %v409_v42, %v417_v51 }
 0x505   :  { %v421_v52 = vmul.f32 %v419_v50, %v419_v50 }
 0x507   :  { %v423_v53 = vsel %vm130_vm0, %v421_v52, 0.0 }
 0x508   :  { %424 = vadd.xlane.f32.xlu2 %v423_v53 }
 0x520   :  { %520 = vrot.lane.b32.xlu2 %v122_v60, %s1111_s5 }
 0x536   :  { %v416_v54 = vpop.xlane.xlu1 %415 }
 0x537   :  { %v418_v55 = vmul.f32 %v416_v54, %v1177_v12 }
 0x539   :  { %v420_v56 = vsub.f32 %v410_v46, %v418_v55 }
 0x53b   :  { %v422_v57 = vmul.f32 %v420_v56, %v420_v56 }
 0x53d   :  { %v426_v58 = vsel %vm130_vm0, %v422_v57, 0.0 }
 0x53e   :  { %427 = vadd.xlane.f32.xlu0 %v426_v58 }
 0x54e   :  { %v460_v14 = vpop.permute.xlu1 %459 }
 0x552   :  { %522 = vrot.lane.b32.xlu0 %v123_v59, %s1111_s5 }
 0x556   :  { %v517_v34 = vpop.permute.xlu1 %516 }
 0x55a   :  { %518 = vrot.lane.b32.xlu0 %v121_v61, %s1111_s5 }
 0x562   :  { %525 = vrot.lane.b32.xlu0 %v1267_v17, %s1111_s5 }
 0x57b   :  { %v425_v63 = vpop.xlane.xlu2 %424 }
 0x57c   :  { %v429_v2 = vmul.f32 %v425_v63, %v1177_v12 }
 0x57e   :  { %v431_v3 = vadd.f32 1e-12, %v429_v2 }
 0x580   :  { %901 = vrsqrt.f32 %v431_v3  ;;  %vm439_vm10 = vweird.f32 %v431_v3 }
 0x583   :  { %v521_v32 = vpop.permute.xlu2 %520 }
 0x586   :  { %v902_v4 = vpop.eup %901 }
 0x587   :  { %v434_v5 = vmul.f32 %v902_v4, %v431_v3  ;;  %vm440_vm9 = vweird.f32 %v902_v4 }
 0x588   :  { %vm441_vm11 = vmor %vm439_vm10, %vm440_vm9 }
 0x589   :  { %v435_v6 = vmul.f32 %v902_v4, %v434_v5 }
 0x58b   :  { %v436_v8 = vmul.f32 0.5, %v435_v6 }
 0x58d   :  { %v437_v9 = vsub.f32 1.5, %v436_v8 }
 0x58f   :  { %v438_v10 = vmul.f32 %v902_v4, %v437_v9 }
 0x591   :  { %v442_v11 = vsel %vm441_vm11, %v902_v4, %v438_v10 }
 0x592   :  { %v453_v13 = vmul.f32 %v442_v11, %v419_v50 }
 0x594   :  { %v456_v15 = vmul.f32 %v1248_v48, %v453_v13 }
 0x596   :  { %v1262_v16 = vadd.f32 %v460_v14, %v456_v15  ;;  %v127_v15 = vld [vmem:[#allocation10 + $0x18] sm:$0xff] }
 0x597   :  { %795 = vmatpush.msra.mxu1 %v127_v15 }
 0x598   :  { %834 = vmatmul.msk.f32.vlgmr.msrb.gmra.mxu2 %vm130_vm0, %v1262_v16 }
 0x5b1   :  { %v428_v18 = vpop.xlane.xlu0 %427 }
 0x5b2   :  { %v430_v19 = vmul.f32 %v428_v18, %v1177_v12 }
 0x5b4   :  { %v432_v20 = vadd.f32 1e-12, %v430_v19  ;;  %v125_v19 = vld [vmem:[#allocation10 + $0x8] sm:$0xff] }
 0x5b6   :  { %903 = vrsqrt.f32 %v432_v20  ;;  %vm449_vm13 = vweird.f32 %v432_v20 }
 0x5bc   :  { %v904_v21 = vpop.eup %903 }
 0x5bd   :  { %v444_v22 = vmul.f32 %v904_v21, %v432_v20  ;;  %vm450_vm12 = vweird.f32 %v904_v21 }
 0x5be   :  { %vm451_vm14 = vmor %vm449_vm13, %vm450_vm12 }
 0x5bf   :  { %v445_v28 = vmul.f32 %v904_v21, %v444_v22 }
 0x5c1   :  { %v446_v23 = vmul.f32 0.5, %v445_v28 }
 0x5c3   :  { %v447_v24 = vsub.f32 1.5, %v446_v23 }
 0x5c4   :  { %v523_v31 = vpop.permute.xlu0 %522 }
 0x5c5   :  { %v448_v27 = vmul.f32 %v904_v21, %v447_v24  ;;  %836 = vmatpush.xpose.msk.msrb.mxu0 %vm528_vm15, %v523_v31  ;;  %845 = vmatpush.xpose.msk.msra.mxu2 %vm528_vm15, %v523_v31 }
 0x5c7   :  { %v452_v29 = vsel %vm451_vm14, %v904_v21, %v448_v27  ;;  %v124_v21 = vld [vmem:[#allocation10] sm:$0xff] }
 0x5c8   :  { %v454_v30 = vmul.f32 %v452_v29, %v420_v56  ;;  %v878_v22 = vpack.i.bf16 %v124_v21, %v125_v19 }
 0x5c9   :  { %837 = vmatpush.xpose.msk.msrb.mxu0 %vm528_vm15, %v521_v32  ;;  %846 = vmatpush.xpose.msk.msra.mxu2 %vm528_vm15, %v521_v32 }
 0x5ca   :  { %v457_v25 = vmul.f32 %v1248_v48, %v454_v30 }
 0x5cc   :  { %v463_v26 = vadd.f32 %v460_v14, %v457_v25  ;;  %v519_v33 = vpop.permute.xlu0 %518  ;;  %v126_v14 = vld [vmem:[#allocation10 + $0x10] sm:$0xff] }
 0x5cd   :  { %838 = vmatpush.xpose.msk.msrb.mxu0 %vm528_vm15, %v519_v33  ;;  %847 = vmatpush.xpose.msk.msra.mxu2 %vm528_vm15, %v519_v33 }
 0x5ce   :  { %835 = vmatmul.msk.f32.gmra.mxu2 %vm130_vm0, %v463_v26  ;;  %796 = vmatpush.msra.mxu1 %v126_v14 }
 0x5d0   :  { %797 = vmatpush.msra.mxu1 %v125_v19 }
 0x5d1   :  { %839 = vmatpush.xpose.msk.msrb.mxu0 %vm528_vm15, %v517_v34  ;;  %848 = vmatpush.xpose.msk.msra.mxu2 %vm528_vm15, %v517_v34 }
 0x5d2   :  { %798 = vmatpush.msra.mxu1 %v124_v21 }
 0x5d4   :  { %v526_v58 = vpop.permute.xlu0 %525 }
 0x61b   :  { %v488_v35 = vpop.f32.mrf.mxu2 }
 0x61c   :  { %v489_v36 = vadd.f32 %v488_v35, %v1267_v17 }
 0x61e   :  { %v496_v37 = vmul.f32 0.044715, %v489_v36  ;;  %v494_v43 = vmul.f32 0.5, %v489_v36 }
 0x620   :  { %v498_v38 = vmul.f32 %v496_v37, %v489_v36 }
 0x622   :  { %v500_v39 = vmul.f32 %v498_v38, %v489_v36 }
 0x624   :  { %v502_v40 = vadd.f32 %v500_v39, %v489_v36 }
 0x626   :  { %v504_v41 = vmul.f32 0.7978846, %v502_v40 }
 0x628   :  { %905 = vtanh.f32 %v504_v41 }
 0x62e   :  { %v906_v42 = vpop.eup %905 }
 0x62f   :  { %v508_v44 = vadd.f32 1.0, %v906_v42 }
 0x631   :  { %v510_v45 = vmul.f32 %v508_v44, %v494_v43 }
 0x633   :  { %840 = vmatmul.msk.f32.vlgmr.msrb.gmra.mxu0 %vm528_vm15, %v510_v45 }
 0x651   :  { %v491_v46 = vpop.f32.mrf.mxu2 }
 0x652   :  { %v492_v47 = vadd.f32 %v491_v46, %v1267_v17 }
 0x654   :  { %v497_v49 = vmul.f32 0.044715, %v492_v47  ;;  %v495_v55 = vmul.f32 0.5, %v492_v47 }
 0x656   :  { %v499_v51 = vmul.f32 %v497_v49, %v492_v47 }
 0x658   :  { %v501_v50 = vmul.f32 %v499_v51, %v492_v47 }
 0x65a   :  { %v503_v52 = vadd.f32 %v501_v50, %v492_v47 }
 0x65c   :  { %v505_v53 = vmul.f32 0.7978846, %v503_v52 }
 0x65e   :  { %907 = vtanh.f32 %v505_v53 }
 0x664   :  { %v908_v54 = vpop.eup %907 }
 0x665   :  { %v509_v56 = vadd.f32 1.0, %v908_v54 }
 0x667   :  { %v511_v57 = vmul.f32 %v509_v56, %v495_v55  ;;  %v681_v56 = vlaneseq }
 0x669   :  { %841 = vmatmul.msk.f32.vlgmr.msra.gmra.mxu2 %vm528_vm15, %v511_v57  ;;  %v682_v57 = vshrl.u32 %v681_v56, 7 }
 0x66b   :  { %883 = vset.pattern.permute.xlu2 %v682_v57 }
 0x6b0   :  { %v560_v59 = vpop.f32.mrf.mxu0 }
 0x6b1   :  { %v561_v60 = vadd.f32 %v560_v59, %v526_v58 }
 0x6b3   :  { %v566_v61 = vadd.f32 %v561_v60, %v1262_v16  ;;  %v873_v16 = vpack.i.bf16 %v126_v14, %v127_v15 }
 0x6b5   :  { %v568_v62 = vsel %vm130_vm0, %v566_v61, 0.0 }
 0x6b6   :  { %569 = vadd.xlane.f32.xlu1 %v568_v62  ;;  %v672_v62 = vperm.slane %v1170_v7, 4 }
 0x6ec   :  { %v563_v63 = vpop.f32.mrf.mxu2 }
 0x6ed   :  { %v564_v2 = vadd.f32 %v563_v63, %v526_v58 }
 0x6ef   :  { %v567_v3 = vadd.f32 %v564_v2, %v463_v26 }
 0x6f1   :  { %v571_v4 = vsel %vm130_vm0, %v567_v3, 0.0 }
 0x6f2   :  { %572 = vadd.xlane.f32.xlu0 %v571_v4 }
 0x706   :  { %612 = vrot.lane.b32.xlu0 %v1248_v48, %s1111_s5 }
 0x70e   :  { %617 = vrot.lane.b32.xlu0 %v1248_v48, %s1112_s25 }
 0x729   :  { %v570_v5 = vpop.xlane.xlu1 %569 }
 0x72a   :  { %v574_v6 = vmul.f32 %v570_v5, %v1177_v12 }
 0x72c   :  { %v576_v8 = vsub.f32 %v566_v61, %v574_v6  ;;  %v687_v61 = vperm.slane %v1219_v0, 1 }
 0x72e   :  { %v578_v9 = vmul.f32 %v576_v8, %v576_v8 }
 0x730   :  { %v580_v10 = vsel %vm130_vm0, %v578_v9, 0.0  ;;  %v1113_v9 = vmov 0  }
 0x731   :  { %581 = vadd.xlane.f32.xlu2 %v580_v10  ;;  %886 = vset.pattern.permute.xlu0 %v1113_v9 }
 0x732   :  { %885 = vset.pattern.permute.xlu1 %v1113_v9 }
 0x749   :  { %874 = vrot.lane.b32.xlu2 %v873_v16, %s1110_s4 }
 0x751   :  { %638 = vrot.lane.b32.xlu2 %v1267_v17, %s1112_s25 }
 0x759   :  { %685 = vperm.xlu2 %883, %v279_v1  }
 0x761   :  { %692 = vperm.xlu2 %883, %v687_v61  }
 0x765   :  { %v573_v11 = vpop.xlane.xlu0 %572 }
 0x766   :  { %v575_v13 = vmul.f32 %v573_v11, %v1177_v12 }
 0x768   :  { %v577_v18 = vsub.f32 %v567_v3, %v575_v13 }
 0x769   :  { %884 = vset.pattern.permute.xlu2 %v1113_v9 }
 0x76a   :  { %v579_v48 = vmul.f32 %v577_v18, %v577_v18 }
 0x76c   :  { %v583_v20 = vsel %vm130_vm0, %v579_v48, 0.0 }
 0x76d   :  { %584 = vadd.xlane.f32.xlu1 %v583_v20 }
 0x778   :  { %v613_v40 = vpop.permute.xlu0 %612 }
 0x780   :  { %v618_v47 = vpop.permute.xlu0 %617 }
 0x786   :  { %879 = vrot.lane.b32.xlu1 %v878_v22, %s1110_s4 }
 0x7a4   :  { %v582_v28 = vpop.xlane.xlu2 %581 }
 0x7a5   :  { %v586_v23 = vmul.f32 %v582_v28, %v1177_v12 }
 0x7a7   :  { %v588_v24 = vadd.f32 1e-12, %v586_v23 }
 0x7a9   :  { %909 = vrsqrt.f32 %v588_v24  ;;  %vm596_vm2 = vweird.f32 %v588_v24 }
 0x7ac   :  { %v875_v27 = vpop.permute.xlu2 %874 }
 0x7ad   :  { %v876_v29 = vunpack.i.l.bf16 %v875_v27  ;;  %v877_v30 = vunpack.i.h.bf16 %v875_v27 }
 0x7af   :  { %659 = vmatpush.msra.mxu3 %v876_v29  ;;  %v910_v25 = vpop.eup %909 }
 0x7b0   :  { %v591_v26 = vmul.f32 %v910_v25, %v588_v24  ;;  %vm597_vm1 = vweird.f32 %v910_v25 }
 0x7b1   :  { %660 = vmatpush.msra.mxu3 %v877_v30  ;;  %vm598_vm3 = vmor %vm596_vm2, %vm597_vm1 }
 0x7b2   :  { %v592_v32 = vmul.f32 %v910_v25, %v591_v26 }
 0x7b4   :  { %v593_v34 = vmul.f32 0.5, %v592_v32  ;;  %v639_v58 = vpop.permute.xlu2 %638 }
 0x7b6   :  { %v594_v35 = vsub.f32 1.5, %v593_v34 }
 0x7b8   :  { %v595_v38 = vmul.f32 %v910_v25, %v594_v35 }
 0x7ba   :  { %v599_v42 = vsel %vm598_vm3, %v910_v25, %v595_v38 }
 0x7bb   :  { %v610_v44 = vmul.f32 %v599_v42, %v576_v8 }
 0x7bc   :  { %v686_v0 = vpop.permute.xlu2 %685 }
 0x7c4   :  { %v693_v13 = vpop.permute.xlu2 %692 }
 0x7e0   :  { %v585_v31 = vpop.xlane.xlu1 %584 }
 0x7e1   :  { %v587_v33 = vmul.f32 %v585_v31, %v1177_v12  ;;  %v615_v12 = vmul.f32 %v613_v40, %v610_v44 }
 0x7e3   :  { %v589_v17 = vadd.f32 1e-12, %v587_v33  ;;  %v1303_v52 = vadd.f32 %v618_v47, %v615_v12 }
 0x7e5   :  { %911 = vrsqrt.f32 %v589_v17  ;;  %vm606_vm5 = vweird.f32 %v589_v17 }
 0x7eb   :  { %v912_v36 = vpop.eup %911 }
 0x7ec   :  { %v601_v37 = vmul.f32 %v912_v36, %v589_v17  ;;  %vm607_vm4 = vweird.f32 %v912_v36 }
 0x7ed   :  { %vm608_vm6 = vmor %vm606_vm5, %vm607_vm4 }
 0x7ee   :  { %v602_v39 = vmul.f32 %v912_v36, %v601_v37 }
 0x7f0   :  { %v603_v41 = vmul.f32 0.5, %v602_v39 }
 0x7f2   :  { %v604_v43 = vsub.f32 1.5, %v603_v41 }
 0x7f4   :  { %v605_v45 = vmul.f32 %v912_v36, %v604_v43 }
 0x7f6   :  { %v609_v49 = vsel %vm608_vm6, %v912_v36, %v605_v45 }
 0x7f7   :  { %v611_v53 = vmul.f32 %v609_v49, %v577_v18  ;;  %v707_v18 = vand.u32 127, %v681_v56 }
 0x7f8   :  { %v880_v46 = vpop.permute.xlu1 %879 }
 0x7f9   :  { %v881_v51 = vunpack.i.l.bf16 %v880_v46  ;;  %v882_v50 = vunpack.i.h.bf16 %v880_v46  ;;  %v616_v54 = vmul.f32 %v613_v40, %v611_v53 }
 0x7fb   :  { %661 = vmatpush.msra.mxu3 %v881_v51  ;;  %v1307_v55 = vadd.f32 %v618_v47, %v616_v54 }
 0x7fd   :  { %662 = vmatpush.msra.mxu3 %v882_v50 }
 0x7fe   :  { %842 = vmatmul.msk.f32.vlgmr.msra.gmra.mxu3 %vm130_vm0, %v1303_v52 }
 0x806   :  { %843 = vmatmul.msk.f32.gmra.mxu3 %vm130_vm0, %v1307_v55 }
 0x881   :  { %v664_v59 = vpop.f32.mrf.mxu3 }
 0x882   :  { %v665_v60 = vadd.f32 %v664_v59, %v639_v58 }
 0x884   :  { %913 = vtanh.f32 %v665_v60 }
 0x889   :  { %v667_v63 = vpop.f32.mrf.mxu3 }
 0x88a   :  { %v914_v2 = vpop.eup %913  ;;  %v668_v3 = vadd.f32 %v667_v63, %v639_v58  ;;  %v777_v63 = vperm.slane %v1170_v7, 3 }
 0x88b   :  { %v673_v4 = vmul.f32 %v914_v2, %v672_v62 }
 0x88c   :  { %915 = vtanh.f32 %v668_v3 }
 0x88d   :  { %v675_v5 = vsel %vm130_vm0, %v673_v4, 0.0 }
 0x88e   :  { %676 = vadd.xlane.f32.xlu1 %v675_v5 }
 0x892   :  { %v916_v6 = vpop.eup %915 }
 0x893   :  { %v674_v8 = vmul.f32 %v916_v6, %v672_v62 }
 0x895   :  { %v678_v1 = vsel %vm130_vm0, %v674_v8, 0.0 }
 0x896   :  { %679 = vadd.xlane.f32.xlu0 %v678_v1 }
 0x901   :  { %v677_v10 = vpop.xlane.xlu1 %676 }
 0x902   :  { %v696_v11 = vadd.f32 %v686_v0, %v677_v10 }
 0x904   :  { %701 = vperm.xlu2 %884, %v696_v11  }
 0x909   :  { %v680_v14 = vpop.xlane.xlu0 %679 }
 0x90a   :  { %v697_v15 = vadd.f32 %v693_v13, %v680_v14 }
 0x90c   :  { %704 = vperm.xlu2 %884, %v697_v15  }
 0x95e   :  { %v702_v16 = vpop.permute.xlu2 %701 }
 0x95f   :  { %v708_v19 = vperm.slane %v702_v16, %v707_v18 }
 0x966   :  { %v705_v48 = vpop.permute.xlu2 %704 }
 0x967   :  { %v709_v20 = vperm.slane %v705_v48, %v707_v18 }
 0x969   :  { %v711_v21 = vsel %vm710_vm7, %v709_v20, %v708_v19 }
 0x96a   :  { %v714_v22 = vsel %vm713_vm8, %v711_v21, -inf }
 0x96b   :  { %715 = vmax.xlane.f32.xlu2 %v714_v22 }
 0x9de   :  { %v716_v28 = vpop.xlane.xlu2 %715 }
 0x9df   :  { %v718_v23 = vperm.slane %v716_v28, 0  ;;  %v719_v24 = vperm.slane %v716_v28, 1 }
 0x9e1   :  { %v722_v27 = vsub.f32 %v696_v11, %v718_v23  ;;  %v723_v29 = vsub.f32 %v697_v15, %v719_v24 }
 0x9e3   :  { %v724_v30 = vmul.f32 1.442695, %v722_v27  ;;  %v726_v25 = vmul.f32 1.442695, %v723_v29 }
 0x9e5   :  { %917 = vpow2.f32 %v724_v30 }
 0x9e6   :  { %919 = vpow2.f32 %v726_v25 }
 0x9eb   :  { %v918_v26 = vpop.eup %917 }
 0x9ec   :  { %v920_v31 = vpop.eup %919  ;;  %731 = vperm.xlu1 %885, %v918_v26  }
 0x9ed   :  { %734 = vperm.xlu0 %886, %v920_v31  }
 0xa5e   :  { %v732_v32 = vpop.permute.xlu1 %731 }
 0xa5f   :  { %v735_v33 = vpop.permute.xlu0 %734  ;;  %v736_v17 = vperm.slane %v732_v32, %v707_v18 }
 0xa60   :  { %v737_v34 = vperm.slane %v735_v33, %v707_v18 }
 0xa62   :  { %v738_v35 = vsel %vm710_vm7, %v737_v34, %v736_v17 }
 0xa63   :  { %v740_v36 = vsel %vm713_vm8, %v738_v35, 0.0 }
 0xa64   :  { %741 = vadd.xlane.f32.xlu1 %v740_v36 }
 0xad7   :  { %v742_v37 = vpop.xlane.xlu1 %741 }
 0xad8   :  { %921 = vrcp.f32 %v742_v37 }
 0xade   :  { %v922_v38 = vpop.eup %921 }
 0xadf   :  { %v746_v39 = vperm.slane %v922_v38, 1  ;;  %v745_v40 = vperm.slane %v922_v38, 0 }
 0xae1   :  { %v750_v41 = vmul.f32 %v920_v31, %v746_v39  ;;  %v749_v42 = vmul.f32 %v918_v26, %v745_v40 }
 0xae3   :  { %758 = vperm.xlu0 %886, %v750_v41   ;;  %753 = vperm.xlu2 %884, %v749_v42  }
 0xb3d   :  { %v754_v43 = vpop.permute.xlu2 %753 }
 0xb3e   :  { %v761_v44 = vmul.f32 %v754_v43, %v1303_v52 }
 0xb40   :  { %v763_v45 = vsel %vm130_vm0, %v761_v44, 0.0 }
 0xb41   :  { %v764_v12 = vrot.slane %v763_v45, 4 }
 0xb43   :  { %v765_v46 = vadd.f32 %v764_v12, %v763_v45 }
 0xb45   :  { %v766_v51 = vrot.slane %v765_v46, 2 }
 0xb47   :  { %v767_v54 = vadd.f32 %v766_v51, %v765_v46 }
 0xb49   :  { %v768_v58 = vrot.slane %v767_v54, 1 }
 0xb4b   :  { %v769_v61 = vadd.f32 %v768_v58, %v767_v54 }
 0xb55   :  { %v759_v47 = vpop.permute.xlu0 %758 }
 0xb56   :  { %v762_v49 = vmul.f32 %v759_v47, %v1307_v55 }
 0xb58   :  { %v770_v50 = vsel %vm130_vm0, %v762_v49, 0.0 }
 0xb59   :  { %v771_v53 = vrot.slane %v770_v50, 4 }
 0xb5b   :  { %v772_v56 = vadd.f32 %v771_v53, %v770_v50 }
 0xb5d   :  { %v773_v57 = vrot.slane %v772_v56, 2 }
 0xb5f   :  { %v774_v59 = vadd.f32 %v773_v57, %v772_v56 }
 0xb61   :  { %v775_v60 = vrot.slane %v774_v59, 1 }
 0xb63   :  { %v776_v62 = vadd.f32 %v775_v60, %v774_v59 }
 0xb65   :  { %v780_v52 = vsel %vm710_vm7, %v776_v62, %v769_v61 }
 0xb66   :  { %844 = vmatmul.msk.f32.vlgmr.msra.gmra.mxu1 %vm130_vm0, %v780_v52 }
 0xbe3   :  { %v800_v55 = vpop.f32.mrf.mxu1 }
 0xbe4   :  { %v801_v2 = vadd.f32 %v800_v55, %v777_v63 }
 0xbe6   :  { %803 = vst [vmem:[#allocation13] sm:$0x3] %v801_v2 }
 0xbe7   :  { %814 = dma.vmem_to_hbm [thread:$0]  %s810_s27, 32, %s812_s30, [#allocation4]  }
 0xbe8   :  { %1099 = dma.done.wait [#allocation4], 32  }
 0xbe9   :  { %1100 = vsyncadd [#allocation4], 4294967264 }
 0xbea   :  { %819 = vsyncpa [#allocation3], 1 }
 0xbeb   :  { %820 = vsyncpa [#allocation6], 1 }
 0xbec   :  { %821 = vsyncpa [#allocation9], 1 }
 0xbed   :  { %822 = vsyncpa [#allocation12], 1 }
 0xbee   :  { %823 = vsyncpa [#allocation4], 1 }

</bundles_post_ra>
